<compile_context>
chip_gen: v7x
topology: tpu7x:2x2x1
jax: 0.10.0
libtpu: 0.0.40
codegen_flags: <defaults>
</compile_context>

<pallas_src>
import functools

import jax
import jax.numpy as jnp
from jax import lax
from jax.experimental import pallas as pl
from jax.experimental.pallas import tpu as pltpu

NEG_SLOPE = 0.01  # torch.nn.LeakyReLU default


# ----------------------------------------------------------------------------
# In-kernel helpers (traced inside the Pallas kernels)
# ----------------------------------------------------------------------------
def _leaky(v):
    return jnp.where(v > 0, v, NEG_SLOPE * v)


def _dleaky(out):
    # LeakyReLU (slope > 0) preserves sign, so the backward mask is recovered
    # from the *output* sign — no pre-activation residual is materialized.
    return jnp.where(out > 0, 1.0, NEG_SLOPE)


def _bf(v):
    return v.astype(jnp.bfloat16)


def _mm(a, b):      # A @ B, f32 operands, f32 accumulation (small feature matmuls)
    return lax.dot_general(a, b, (((1,), (0,)), ((), ())),
                           preferred_element_type=jnp.float32)


def _mm_nt(a, b):   # A @ B^T — MXU consumes B directly, no transpose copy
    return lax.dot_general(a, b, (((1,), (1,)), ((), ())),
                           preferred_element_type=jnp.float32)


def _mm_tn(a, b):   # A^T @ B — MXU consumes A directly, no transpose copy
    return lax.dot_general(a, b, (((0,), (0,)), ((), ())),
                           preferred_element_type=jnp.float32)


def _agg(adj_bf, x):
    # O(N^2) adjacency aggregation: bf16 operands, f32 accumulation (native MXU).
    return lax.dot_general(adj_bf, _bf(x), (((1,), (0,)), ((), ())),
                           preferred_element_type=jnp.float32)


def _outer_nt_bf(a, b):
    # A @ B^T with bf16 operands, f32 accumulation (dadj outer products).
    return lax.dot_general(_bf(a), _bf(b), (((1,), (1,)), ((), ())),
                           preferred_element_type=jnp.float32)


# ----------------------------------------------------------------------------
# Fused forward kernel: one pallas_call for the whole network.
# Also writes the cheap (N,16) x1/x3 residuals so the backward never re-runs
# the O(N^2) adjacency aggregations.
# ----------------------------------------------------------------------------
def _gcn_fwd_kernel(adj_ref, x0_ref,
                    wc1_ref, bc1_ref, wl1_ref, bl1_ref,
                    wc2_ref, bc2_ref, wl2_ref, bl2_ref,
                    wl3r_ref, bl3_ref,
                    out_ref, x1_ref, x3_ref):
    adj = adj_ref[...]                                   # (N, N) bf16
    h1 = _mm(x0_ref[...], wc1_ref[...])                  # conv1: X W       (f32)
    x1 = _leaky(_agg(adj, h1) + bc1_ref[...])            # conv1: A (X W) + b
    x2 = _leaky(_mm(x1, wl1_ref[...]) + bl1_ref[...])    # lin1
    h2 = _mm(x2, wc2_ref[...])                           # conv2: X W
    x3 = _leaky(_agg(adj, h2) + bc2_ref[...])            # conv2 aggregation
    x4 = _leaky(_mm(x3, wl2_ref[...]) + bl2_ref[...])    # lin2
    # lin3 (out width 1, K=4): broadcast-mul + lane reduce on the VPU/XLU —
    # frees the MXU slot instead of a 1/256-utilized matmul.
    x5 = _leaky(jnp.sum(x4 * wl3r_ref[...], axis=1, keepdims=True) + bl3_ref[...])

    out_ref[...] = x5                                    # (N, 1)
    x1_ref[...] = x1                                     # residuals (tiny HBM)
    x3_ref[...] = x3


# ----------------------------------------------------------------------------
# Fused backward kernel: cheap recompute from x1/x3 residuals, then all grads.
# adj is symmetric (undirected graph + symmetric gcn_norm), so adj^T @ g is
# computed as adj @ g — no in-kernel NxN transpose / extra (N,N) buffer.
# ----------------------------------------------------------------------------
def _gcn_bwd_kernel(adj_ref, x0_ref,
                    wc1_ref, bc1_ref, wl1_ref, bl1_ref,
                    wc2_ref, bc2_ref, wl2_ref, bl2_ref,
                    wl3r_ref, bl3_ref,
                    x1_ref, x3_ref, g_ref,
                    dadj_ref, dx0_ref,
                    dwc1_ref, dbc1_ref, dwl1_ref, dbl1_ref,
                    dwc2_ref, dbc2_ref, dwl2_ref, dbl2_ref,
                    dwl3r_ref, dbl3_ref):
    del bc1_ref, bc2_ref  # not needed: x1/x3 residuals already include the biases
    adj = adj_ref[...]                                   # (N, N) bf16
    x0 = x0_ref[...]
    wc1 = wc1_ref[...]
    wl1 = wl1_ref[...]
    wc2 = wc2_ref[...]
    wl2 = wl2_ref[...]
    wl3r = wl3r_ref[...]
    x1 = x1_ref[...]
    x3 = x3_ref[...]

    # Cheap recompute (no O(N^2) matmuls, thanks to the x1/x3 residuals).
    h1 = _mm(x0, wc1)                                    # needed for dadj
    x2 = _leaky(_mm(x1, wl1) + bl1_ref[...])
    h2 = _mm(x2, wc2)                                    # needed for dadj
    x4 = _leaky(_mm(x3, wl2) + bl2_ref[...])
    x5 = _leaky(jnp.sum(x4 * wl3r, axis=1, keepdims=True) + bl3_ref[...])

    # lin3 (all VPU/XLU: width-1 output, K=4)
    g_a5 = g_ref[...] * _dleaky(x5)                      # (N, 1)
    dwl3r_ref[...] = jnp.sum(x4 * g_a5, axis=0, keepdims=True)   # (1, 4)
    dbl3_ref[...] = jnp.sum(g_a5, axis=0, keepdims=True)         # (1, 1)

    # lin2
    g_a4 = (g_a5 * wl3r) * _dleaky(x4)                   # (N, 4)
    dwl2_ref[...] = _mm_tn(x3, g_a4)
    dbl2_ref[...] = jnp.sum(g_a4, axis=0, keepdims=True)

    # conv2 (adj^T == adj)
    g_a3 = _mm_nt(g_a4, wl2) * _dleaky(x3)               # (N, 16)
    dbc2_ref[...] = jnp.sum(g_a3, axis=0, keepdims=True)
    g_h2 = _agg(adj, g_a3)
    dwc2_ref[...] = _mm_tn(x2, g_h2)

    # lin1
    g_a2 = _mm_nt(g_h2, wc2) * _dleaky(x2)
    dwl1_ref[...] = _mm_tn(x1, g_a2)
    dbl1_ref[...] = jnp.sum(g_a2, axis=0, keepdims=True)

    # conv1 (adj^T == adj)
    g_a1 = _mm_nt(g_a2, wl1) * _dleaky(x1)
    dbc1_ref[...] = jnp.sum(g_a1, axis=0, keepdims=True)
    g_h1 = _agg(adj, g_a1)
    dwc1_ref[...] = _mm_tn(x0, g_h1)
    dx0_ref[...] = _mm_nt(g_h1, wc1)

    # d adj = g_a1 h1^T + g_a3 h2^T : write then accumulate into the output ref
    # so only one (N, N) temporary is ever live (bf16 operands, f32 accumulate).
    dadj_ref[...] = _outer_nt_bf(g_a1, h1)
    dadj_ref[...] += _outer_nt_bf(g_a3, h2)


# ----------------------------------------------------------------------------
# pallas_call wrappers + custom VJP
# ----------------------------------------------------------------------------
def _full_spec(shape):
    # Grid-less call: every block_shape equals the full array extent, which is
    # what makes last dims of 16/4/1 legal (the (8,128) divisibility rule only
    # applies to true sub-tiles).
    zeros = (0,) * len(shape)
    return pl.BlockSpec(shape, lambda: zeros)


@functools.lru_cache(maxsize=None)
def _vmem_limit_bytes():
    # Raise the scoped-VMEM limit above the 16/32 MiB defaults so the grid-less
    # fused kernels keep working for much larger N; leave ~15% headroom.
    cap = 64 * 1024 * 1024
    try:
        info = pltpu.get_tpu_info()
        cap = int(getattr(info, "vmem_capacity_bytes", cap))
    except Exception:
        pass
    return int(cap * 0.85)


def _compiler_params():
    return pltpu.CompilerParams(vmem_limit_bytes=_vmem_limit_bytes())


def _fwd_cost(n):
    flops = 4 * n * n * 16 + 6 * n * 16 * 16 + 2 * n * 16 * 4 + 8 * n
    byts = n * n * 2 + 4 * (4 * n * 16 + n) + 4 * (3 * 16 * 16 + 16 * 4 + 3 * 16 + 9)
    return pl.CostEstimate(flops=int(flops), transcendentals=0,
                           bytes_accessed=int(byts))


def _bwd_cost(n):
    flops = 8 * n * n * 16 + 16 * n * 16 * 16 + 4 * n * 16 * 4 + 16 * n
    byts = n * n * 2 + n * n * 4 + 4 * (6 * n * 16 + 2 * n) + 8 * (3 * 16 * 16 + 16 * 4 + 3 * 16 + 9)
    return pl.CostEstimate(flops=int(flops), transcendentals=0,
                           bytes_accessed=int(byts))


# TODO(synk): for large N, tile the adj aggregation with a real grid (split the
# chain at x2, rows "parallel" — mandatory on v7x's 2 TensorCores / 64 MiB VMEM,
# tile>=512 rows on v6e's 128 MiB — reduction axis last + "arbitrary"), and
# replace the dense O(N^2) adjacency / dense dadj with a segment-sum or
# block-sparse aggregation via pltpu.PrefetchScalarGridSpec emitting per-edge
# cotangents.  At the demo shapes a single fused block is optimal.
def _gcn_fwd_call(adj, *rest):
    n = adj.shape[0]
    adj_bf = adj.astype(jnp.bfloat16)     # bf16 operand: native MXU, half VMEM
    return pl.pallas_call(
        _gcn_fwd_kernel,
        out_shape=(jax.ShapeDtypeStruct((n, 1), jnp.float32),
                   jax.ShapeDtypeStruct((n, 16), jnp.float32),
                   jax.ShapeDtypeStruct((n, 16), jnp.float32)),
        in_specs=[_full_spec(adj_bf.shape)] + [_full_spec(a.shape) for a in rest],
        out_specs=(_full_spec((n, 1)), _full_spec((n, 16)), _full_spec((n, 16))),
        compiler_params=_compiler_params(),
        cost_estimate=_fwd_cost(n),
    )(adj_bf, *rest)


def _gcn_bwd_call(args, x1, x3, g):
    adj, rest = args[0], args[1:]
    n = adj.shape[0]
    adj_bf = adj.astype(jnp.bfloat16)
    return pl.pallas_call(
        _gcn_bwd_kernel,
        out_shape=tuple(jax.ShapeDtypeStruct(a.shape, jnp.float32) for a in args),
        in_specs=([_full_spec(adj_bf.shape)]
                  + [_full_spec(a.shape) for a in rest]
                  + [_full_spec(x1.shape), _full_spec(x3.shape), _full_spec(g.shape)]),
        out_specs=tuple(_full_spec(a.shape) for a in args),
        compiler_params=_compiler_params(),
        cost_estimate=_bwd_cost(n),
    )(adj_bf, *rest, x1, x3, g)


@jax.custom_vjp
def gcn_fused(adj, x0, wc1, bc1, wl1, bl1, wc2, bc2, wl2, bl2, wl3r, bl3):
    """Fused GCN forward: per-node energy (N, 1), one Pallas kernel.

    Note: wl3r is the lin3 weight in (1, 4) row form (out, in); adj must be the
    symmetric gcn_norm adjacency (undirected graph), as exploited in backward.
    """
    out, _, _ = _gcn_fwd_call(adj, x0, wc1, bc1, wl1, bl1,
                              wc2, bc2, wl2, bl2, wl3r, bl3)
    return out


def _gcn_fused_fwd(*args):
    out, x1, x3 = _gcn_fwd_call(*args)
    # Residuals: primal inputs (already in HBM) + the two post-aggregation
    # activations (N,16 each) so backward never re-runs the O(N^2) matmuls.
    return out, (args, x1, x3)


def _gcn_fused_bwd(res, g):
    args, x1, x3 = res
    return tuple(_gcn_bwd_call(args, x1, x3, g))


gcn_fused.defvjp(_gcn_fused_fwd, _gcn_fused_bwd)


# ----------------------------------------------------------------------------
# Model glue (tiny irregular gather/scatter stays in XLA)
# ----------------------------------------------------------------------------
def init_params(key):
    ks = jax.random.split(key, 11)

    def lin(kw, kb, fan_in, fan_out):
        bound = 1.0 / float(fan_in) ** 0.5
        w = jax.random.uniform(kw, (fan_in, fan_out), jnp.float32, -bound, bound)
        b = jax.random.uniform(kb, (1, fan_out), jnp.float32, -bound, bound)
        return w, b

    params = {"emb": jax.random.normal(ks[0], (118, 16), jnp.float32)}
    params["conv1_w"], params["conv1_b"] = lin(ks[1], ks[2], 16, 16)
    params["lin1_w"], params["lin1_b"] = lin(ks[3], ks[4], 16, 16)
    params["conv2_w"], params["conv2_b"] = lin(ks[5], ks[6], 16, 16)
    params["lin2_w"], params["lin2_b"] = lin(ks[7], ks[8], 16, 4)
    params["lin3_w"], params["lin3_b"] = lin(ks[9], ks[10], 4, 1)
    return params


def gcn_dense_adj(edge_index, edge_weight, num_nodes):
    """Dense D^{-1/2} (A + I) D^{-1/2} with edge weights (PyG gcn_norm)."""
    src, dst = edge_index[0], edge_index[1]
    loop = jnp.arange(num_nodes)
    src_f = jnp.concatenate([src, loop])
    dst_f = jnp.concatenate([dst, loop])
    w_f = jnp.concatenate([edge_weight, jnp.ones((num_nodes,), jnp.float32)])
    deg = jnp.zeros((num_nodes,), jnp.float32).at[dst_f].add(w_f)
    dinv = jnp.where(deg > 0, 1.0 / jnp.sqrt(deg), 0.0)
    norm = dinv[src_f] * w_f * dinv[dst_f]
    return jnp.zeros((num_nodes, num_nodes), jnp.float32).at[dst_f, src_f].add(norm)


def forward_energy(pos, z, edge_index, batch, params, num_graphs):
    src, dst = edge_index[0], edge_index[1]
    diff = pos[src] - pos[dst]
    sq = jnp.sum(diff * diff, axis=1)
    # Safe norm: identical forward value, finite gradient for zero-length edges.
    edge_attr = jnp.where(sq > 0, jnp.sqrt(jnp.where(sq > 0, sq, 1.0)), 0.0)

    n = z.shape[0]
    adj = gcn_dense_adj(edge_index, edge_attr, n)   # symmetric for undirected graphs

    x0 = params["emb"][z]                           # Embedding lookup (glue)
    node_e = gcn_fused(adj, x0,
                       params["conv1_w"], params["conv1_b"],
                       params["lin1_w"], params["lin1_b"],
                       params["conv2_w"], params["conv2_b"],
                       params["lin2_w"], params["lin2_b"],
                       params["lin3_w"].T,          # lin3 weight as (1, 4) row
                       params["lin3_b"])            # -> (N, 1)
    # global_add_pool (tiny scatter-add on (N, 1) -> (G, 1); stays in XLA)
    return jnp.zeros((num_graphs, 1), jnp.float32).at[batch].add(node_e)


def energy_and_force(pos, z, edge_index, batch, params, num_graphs):
    # F = -d(sum E)/d pos  (torch.autograd.grad -> jax.grad through custom_vjp)
    def e_sum(p):
        e = forward_energy(p, z, edge_index, batch, params, num_graphs)
        return jnp.sum(e), e

    (_, e_graph), grad_pos = jax.value_and_grad(e_sum, has_aux=True)(pos)
    return e_graph, -grad_pos


if __name__ == "__main__":
    key = jax.random.PRNGKey(0)
    kp, kpos, kz = jax.random.split(key, 3)
    params = init_params(kp)

    num_graphs = 2
    nodes_per_graph = 8
    n_nodes = num_graphs * nodes_per_graph

    pos = jax.random.normal(kpos, (n_nodes, 3), jnp.float32)
    z = jax.random.randint(kz, (n_nodes,), 1, 118)

    # chain edges within each graph, both directions (undirected graph)
    edges = []
    for g in range(num_graphs):
        off = g * nodes_per_graph
        for i in range(nodes_per_graph - 1):
            edges.append((off + i, off + i + 1))
            edges.append((off + i + 1, off + i))
    edge_index = jnp.array(edges, dtype=jnp.int32).T      # (2, E)
    batch = jnp.repeat(jnp.arange(num_graphs, dtype=jnp.int32), nodes_per_graph)

    fn = jax.jit(functools.partial(energy_and_force, num_graphs=num_graphs))
    e_hat, f_hat = fn(pos, z, edge_index, batch, params)
    jax.block_until_ready((e_hat, f_hat))

    assert e_hat.shape == (num_graphs, 1)
    assert f_hat.shape == (n_nodes, 3)
    assert bool(jnp.all(jnp.isfinite(e_hat))) and bool(jnp.all(jnp.isfinite(f_hat)))
    print("KERNEL_OK")
</pallas_src>

<mosaic_0001>
module attributes {stable_mosaic.version = 11 : i64} {
  func.func private @main(%arg0: i32) attributes {dimension_semantics = [#tpu.dimension_semantics<core_parallel>], iteration_bounds = array<i64: 2>, tpu.core_type = #tpu.core_type<sc_scalar_subcore>, window_params = []} {
    return
  }
}

module attributes {stable_mosaic.version = 11 : i64} {
  func.func private @main(%arg0: i32) attributes {dimension_semantics = [#tpu.dimension_semantics<core_parallel>], iteration_bounds = array<i64: 2>, tpu.core_type = #tpu.core_type<sc_scalar_subcore>, window_params = []} {
    return
  }
}

module attributes {stable_mosaic.version = 11 : i64} {
  func.func @_gcn_fwd_kernel(%arg0: memref<16x16xbf16, #tpu.memory_space<vmem>>, %arg1: memref<16x16xf32, #tpu.memory_space<vmem>>, %arg2: memref<16x16xf32, #tpu.memory_space<vmem>>, %arg3: memref<1x16xf32, #tpu.memory_space<vmem>>, %arg4: memref<16x16xf32, #tpu.memory_space<vmem>>, %arg5: memref<1x16xf32, #tpu.memory_space<vmem>>, %arg6: memref<16x16xf32, #tpu.memory_space<vmem>>, %arg7: memref<1x16xf32, #tpu.memory_space<vmem>>, %arg8: memref<16x4xf32, #tpu.memory_space<vmem>>, %arg9: memref<1x4xf32, #tpu.memory_space<vmem>>, %arg10: memref<1x4xf32, #tpu.memory_space<vmem>>, %arg11: memref<1x1xf32, #tpu.memory_space<vmem>>, %arg12: memref<16x1xf32, #tpu.memory_space<vmem>>, %arg13: memref<16x16xf32, #tpu.memory_space<vmem>>, %arg14: memref<16x16xf32, #tpu.memory_space<vmem>>) attributes {dimension_semantics = [], scalar_prefetch = 0 : i64, scratch_operands = 0 : i64, tpu.core_type = #tpu.core_type<tc>} {
    %c0 = arith.constant 0 : index
    %c0_0 = arith.constant 0 : index
    %0 = vector.load %arg0[%c0, %c0_0] : memref<16x16xbf16, #tpu.memory_space<vmem>>, vector<16x16xbf16>
    %c0_1 = arith.constant 0 : index
    %c0_2 = arith.constant 0 : index
    %1 = vector.load %arg1[%c0_1, %c0_2] : memref<16x16xf32, #tpu.memory_space<vmem>>, vector<16x16xf32>
    %c0_3 = arith.constant 0 : index
    %c0_4 = arith.constant 0 : index
    %2 = vector.load %arg2[%c0_3, %c0_4] : memref<16x16xf32, #tpu.memory_space<vmem>>, vector<16x16xf32>
    %cst = arith.constant dense<0.000000e+00> : vector<16x16xf32>
    %3 = tpu.matmul %1, %2, %cst {dimension_numbers = #tpu.dot_dimension_numbers<[1], [0], [0], [1], [0, 0, 1, 1], [], []>} : vector<16x16xf32>, vector<16x16xf32>, vector<16x16xf32> -> vector<16x16xf32>
    %4 = arith.truncf %3 : vector<16x16xf32> to vector<16x16xbf16>
    %cst_5 = arith.constant dense<0.000000e+00> : vector<16x16xf32>
    %5 = tpu.matmul %0, %4, %cst_5 {dimension_numbers = #tpu.dot_dimension_numbers<[1], [0], [0], [1], [0, 0, 1, 1], [], []>} : vector<16x16xbf16>, vector<16x16xbf16>, vector<16x16xf32> -> vector<16x16xf32>
    %c0_6 = arith.constant 0 : index
    %c0_7 = arith.constant 0 : index
    %6 = vector.load %arg3[%c0_6, %c0_7] : memref<1x16xf32, #tpu.memory_space<vmem>>, vector<1x16xf32>
    %7 = vector.broadcast %6 : vector<1x16xf32> to vector<16x16xf32>
    %8 = arith.addf %5, %7 : vector<16x16xf32>
    %cst_8 = arith.constant 0.000000e+00 : f32
    %9 = vector.broadcast %cst_8 : f32 to vector<16x16xf32>
    %10 = arith.cmpf ogt, %8, %9 : vector<16x16xf32>
    %cst_9 = arith.constant 0.00999999977 : f32
    %11 = vector.broadcast %cst_9 : f32 to vector<16x16xf32>
    %12 = arith.mulf %11, %8 : vector<16x16xf32>
    %13 = arith.select %10, %8, %12 : vector<16x16xi1>, vector<16x16xf32>
    %c0_10 = arith.constant 0 : index
    %c0_11 = arith.constant 0 : index
    %14 = vector.load %arg4[%c0_10, %c0_11] : memref<16x16xf32, #tpu.memory_space<vmem>>, vector<16x16xf32>
    %cst_12 = arith.constant dense<0.000000e+00> : vector<16x16xf32>
    %15 = tpu.matmul %13, %14, %cst_12 {dimension_numbers = #tpu.dot_dimension_numbers<[1], [0], [0], [1], [0, 0, 1, 1], [], []>} : vector<16x16xf32>, vector<16x16xf32>, vector<16x16xf32> -> vector<16x16xf32>
    %c0_13 = arith.constant 0 : index
    %c0_14 = arith.constant 0 : index
    %16 = vector.load %arg5[%c0_13, %c0_14] : memref<1x16xf32, #tpu.memory_space<vmem>>, vector<1x16xf32>
    %17 = vector.broadcast %16 : vector<1x16xf32> to vector<16x16xf32>
    %18 = arith.addf %15, %17 : vector<16x16xf32>
    %cst_15 = arith.constant 0.000000e+00 : f32
    %19 = vector.broadcast %cst_15 : f32 to vector<16x16xf32>
    %20 = arith.cmpf ogt, %18, %19 : vector<16x16xf32>
    %cst_16 = arith.constant 0.00999999977 : f32
    %21 = vector.broadcast %cst_16 : f32 to vector<16x16xf32>
    %22 = arith.mulf %21, %18 : vector<16x16xf32>
    %23 = arith.select %20, %18, %22 : vector<16x16xi1>, vector<16x16xf32>
    %c0_17 = arith.constant 0 : index
    %c0_18 = arith.constant 0 : index
    %24 = vector.load %arg6[%c0_17, %c0_18] : memref<16x16xf32, #tpu.memory_space<vmem>>, vector<16x16xf32>
    %cst_19 = arith.constant dense<0.000000e+00> : vector<16x16xf32>
    %25 = tpu.matmul %23, %24, %cst_19 {dimension_numbers = #tpu.dot_dimension_numbers<[1], [0], [0], [1], [0, 0, 1, 1], [], []>} : vector<16x16xf32>, vector<16x16xf32>, vector<16x16xf32> -> vector<16x16xf32>
    %26 = arith.truncf %25 : vector<16x16xf32> to vector<16x16xbf16>
    %cst_20 = arith.constant dense<0.000000e+00> : vector<16x16xf32>
    %27 = tpu.matmul %0, %26, %cst_20 {dimension_numbers = #tpu.dot_dimension_numbers<[1], [0], [0], [1], [0, 0, 1, 1], [], []>} : vector<16x16xbf16>, vector<16x16xbf16>, vector<16x16xf32> -> vector<16x16xf32>
    %c0_21 = arith.constant 0 : index
    %c0_22 = arith.constant 0 : index
    %28 = vector.load %arg7[%c0_21, %c0_22] : memref<1x16xf32, #tpu.memory_space<vmem>>, vector<1x16xf32>
    %29 = vector.broadcast %28 : vector<1x16xf32> to vector<16x16xf32>
    %30 = arith.addf %27, %29 : vector<16x16xf32>
    %cst_23 = arith.constant 0.000000e+00 : f32
    %31 = vector.broadcast %cst_23 : f32 to vector<16x16xf32>
    %32 = arith.cmpf ogt, %30, %31 : vector<16x16xf32>
    %cst_24 = arith.constant 0.00999999977 : f32
    %33 = vector.broadcast %cst_24 : f32 to vector<16x16xf32>
    %34 = arith.mulf %33, %30 : vector<16x16xf32>
    %35 = arith.select %32, %30, %34 : vector<16x16xi1>, vector<16x16xf32>
    %c0_25 = arith.constant 0 : index
    %c0_26 = arith.constant 0 : index
    %36 = vector.load %arg8[%c0_25, %c0_26] : memref<16x4xf32, #tpu.memory_space<vmem>>, vector<16x4xf32>
    %cst_27 = arith.constant dense<0.000000e+00> : vector<16x4xf32>
    %37 = tpu.matmul %35, %36, %cst_27 {dimension_numbers = #tpu.dot_dimension_numbers<[1], [0], [0], [1], [0, 0, 1, 1], [], []>} : vector<16x16xf32>, vector<16x4xf32>, vector<16x4xf32> -> vector<16x4xf32>
    %c0_28 = arith.constant 0 : index
    %c0_29 = arith.constant 0 : index
    %38 = vector.load %arg9[%c0_28, %c0_29] : memref<1x4xf32, #tpu.memory_space<vmem>>, vector<1x4xf32>
    %39 = vector.broadcast %38 : vector<1x4xf32> to vector<16x4xf32>
    %40 = arith.addf %37, %39 : vector<16x4xf32>
    %cst_30 = arith.constant 0.000000e+00 : f32
    %41 = vector.broadcast %cst_30 : f32 to vector<16x4xf32>
    %42 = arith.cmpf ogt, %40, %41 : vector<16x4xf32>
    %cst_31 = arith.constant 0.00999999977 : f32
    %43 = vector.broadcast %cst_31 : f32 to vector<16x4xf32>
    %44 = arith.mulf %43, %40 : vector<16x4xf32>
    %45 = arith.select %42, %40, %44 : vector<16x4xi1>, vector<16x4xf32>
    %c0_32 = arith.constant 0 : index
    %c0_33 = arith.constant 0 : index
    %46 = vector.load %arg10[%c0_32, %c0_33] : memref<1x4xf32, #tpu.memory_space<vmem>>, vector<1x4xf32>
    %47 = vector.broadcast %46 : vector<1x4xf32> to vector<16x4xf32>
    %48 = arith.mulf %45, %47 : vector<16x4xf32>
    %cst_34 = arith.constant dense<0.000000e+00> : vector<16xf32>
    %49 = vector.multi_reduction <add>, %48, %cst_34 [1] : vector<16x4xf32> to vector<16xf32>
    %50 = vector.shape_cast %49 : vector<16xf32> to vector<16x1xf32>
    %c0_35 = arith.constant 0 : index
    %c0_36 = arith.constant 0 : index
    %51 = vector.load %arg11[%c0_35, %c0_36] : memref<1x1xf32, #tpu.memory_space<vmem>>, vector<1x1xf32>
    %52 = vector.broadcast %51 : vector<1x1xf32> to vector<16x1xf32>
    %53 = arith.addf %50, %52 : vector<16x1xf32>
    %cst_37 = arith.constant 0.000000e+00 : f32
    %54 = vector.broadcast %cst_37 : f32 to vector<16x1xf32>
    %55 = arith.cmpf ogt, %53, %54 : vector<16x1xf32>
    %cst_38 = arith.constant 0.00999999977 : f32
    %56 = vector.broadcast %cst_38 : f32 to vector<16x1xf32>
    %57 = arith.mulf %56, %53 : vector<16x1xf32>
    %58 = arith.select %55, %53, %57 : vector<16x1xi1>, vector<16x1xf32>
    %c0_39 = arith.constant 0 : index
    %c0_40 = arith.constant 0 : index
    %59 = vector.load %arg12[%c0_39, %c0_40] : memref<16x1xf32, #tpu.memory_space<vmem>>, vector<16x1xf32>
    tpu.vector_store %arg12[%c0_39, %c0_40], %58 {strides = array<i32>} : memref<16x1xf32, #tpu.memory_space<vmem>>, vector<16x1xf32>,
    %c0_41 = arith.constant 0 : index
    %c0_42 = arith.constant 0 : index
    %60 = vector.load %arg13[%c0_41, %c0_42] : memref<16x16xf32, #tpu.memory_space<vmem>>, vector<16x16xf32>
    tpu.vector_store %arg13[%c0_41, %c0_42], %13 {strides = array<i32>} : memref<16x16xf32, #tpu.memory_space<vmem>>, vector<16x16xf32>,
    %c0_43 = arith.constant 0 : index
    %c0_44 = arith.constant 0 : index
    %61 = vector.load %arg14[%c0_43, %c0_44] : memref<16x16xf32, #tpu.memory_space<vmem>>, vector<16x16xf32>
    tpu.vector_store %arg14[%c0_43, %c0_44], %35 {strides = array<i32>} : memref<16x16xf32, #tpu.memory_space<vmem>>, vector<16x16xf32>,
    return
  }
}

module attributes {stable_mosaic.version = 11 : i64} {
  func.func @_gcn_bwd_kernel(%arg0: memref<16x16xbf16, #tpu.memory_space<vmem>>, %arg1: memref<16x16xf32, #tpu.memory_space<vmem>>, %arg2: memref<16x16xf32, #tpu.memory_space<vmem>>, %arg3: memref<1x16xf32, #tpu.memory_space<vmem>>, %arg4: memref<16x16xf32, #tpu.memory_space<vmem>>, %arg5: memref<1x16xf32, #tpu.memory_space<vmem>>, %arg6: memref<16x16xf32, #tpu.memory_space<vmem>>, %arg7: memref<1x16xf32, #tpu.memory_space<vmem>>, %arg8: memref<16x4xf32, #tpu.memory_space<vmem>>, %arg9: memref<1x4xf32, #tpu.memory_space<vmem>>, %arg10: memref<1x4xf32, #tpu.memory_space<vmem>>, %arg11: memref<1x1xf32, #tpu.memory_space<vmem>>, %arg12: memref<16x16xf32, #tpu.memory_space<vmem>>, %arg13: memref<16x16xf32, #tpu.memory_space<vmem>>, %arg14: memref<16x1xf32, #tpu.memory_space<vmem>>, %arg15: memref<16x16xf32, #tpu.memory_space<vmem>>, %arg16: memref<16x16xf32, #tpu.memory_space<vmem>>, %arg17: memref<16x16xf32, #tpu.memory_space<vmem>>, %arg18: memref<1x16xf32, #tpu.memory_space<vmem>>, %arg19: memref<16x16xf32, #tpu.memory_space<vmem>>, %arg20: memref<1x16xf32, #tpu.memory_space<vmem>>, %arg21: memref<16x16xf32, #tpu.memory_space<vmem>>, %arg22: memref<1x16xf32, #tpu.memory_space<vmem>>, %arg23: memref<16x4xf32, #tpu.memory_space<vmem>>, %arg24: memref<1x4xf32, #tpu.memory_space<vmem>>, %arg25: memref<1x4xf32, #tpu.memory_space<vmem>>, %arg26: memref<1x1xf32, #tpu.memory_space<vmem>>) attributes {dimension_semantics = [], scalar_prefetch = 0 : i64, scratch_operands = 0 : i64, tpu.core_type = #tpu.core_type<tc>} {
    %c0 = arith.constant 0 : index
    %c0_0 = arith.constant 0 : index
    %0 = vector.load %arg0[%c0, %c0_0] : memref<16x16xbf16, #tpu.memory_space<vmem>>, vector<16x16xbf16>
    %c0_1 = arith.constant 0 : index
    %c0_2 = arith.constant 0 : index
    %1 = vector.load %arg1[%c0_1, %c0_2] : memref<16x16xf32, #tpu.memory_space<vmem>>, vector<16x16xf32>
    %c0_3 = arith.constant 0 : index
    %c0_4 = arith.constant 0 : index
    %2 = vector.load %arg2[%c0_3, %c0_4] : memref<16x16xf32, #tpu.memory_space<vmem>>, vector<16x16xf32>
    %c0_5 = arith.constant 0 : index
    %c0_6 = arith.constant 0 : index
    %3 = vector.load %arg4[%c0_5, %c0_6] : memref<16x16xf32, #tpu.memory_space<vmem>>, vector<16x16xf32>
    %c0_7 = arith.constant 0 : index
    %c0_8 = arith.constant 0 : index
    %4 = vector.load %arg6[%c0_7, %c0_8] : memref<16x16xf32, #tpu.memory_space<vmem>>, vector<16x16xf32>
    %c0_9 = arith.constant 0 : index
    %c0_10 = arith.constant 0 : index
    %5 = vector.load %arg8[%c0_9, %c0_10] : memref<16x4xf32, #tpu.memory_space<vmem>>, vector<16x4xf32>
    %c0_11 = arith.constant 0 : index
    %c0_12 = arith.constant 0 : index
    %6 = vector.load %arg10[%c0_11, %c0_12] : memref<1x4xf32, #tpu.memory_space<vmem>>, vector<1x4xf32>
    %c0_13 = arith.constant 0 : index
    %c0_14 = arith.constant 0 : index
    %7 = vector.load %arg12[%c0_13, %c0_14] : memref<16x16xf32, #tpu.memory_space<vmem>>, vector<16x16xf32>
    %c0_15 = arith.constant 0 : index
    %c0_16 = arith.constant 0 : index
    %8 = vector.load %arg13[%c0_15, %c0_16] : memref<16x16xf32, #tpu.memory_space<vmem>>, vector<16x16xf32>
    %cst = arith.constant dense<0.000000e+00> : vector<16x16xf32>
    %9 = tpu.matmul %1, %2, %cst {dimension_numbers = #tpu.dot_dimension_numbers<[1], [0], [0], [1], [0, 0, 1, 1], [], []>} : vector<16x16xf32>, vector<16x16xf32>, vector<16x16xf32> -> vector<16x16xf32>
    %cst_17 = arith.constant dense<0.000000e+00> : vector<16x16xf32>
    %10 = tpu.matmul %7, %3, %cst_17 {dimension_numbers = #tpu.dot_dimension_numbers<[1], [0], [0], [1], [0, 0, 1, 1], [], []>} : vector<16x16xf32>, vector<16x16xf32>, vector<16x16xf32> -> vector<16x16xf32>
    %c0_18 = arith.constant 0 : index
    %c0_19 = arith.constant 0 : index
    %11 = vector.load %arg5[%c0_18, %c0_19] : memref<1x16xf32, #tpu.memory_space<vmem>>, vector<1x16xf32>
    %12 = vector.broadcast %11 : vector<1x16xf32> to vector<16x16xf32>
    %13 = arith.addf %10, %12 : vector<16x16xf32>
    %cst_20 = arith.constant 0.000000e+00 : f32
    %14 = vector.broadcast %cst_20 : f32 to vector<16x16xf32>
    %15 = arith.cmpf ogt, %13, %14 : vector<16x16xf32>
    %cst_21 = arith.constant 0.00999999977 : f32
    %16 = vector.broadcast %cst_21 : f32 to vector<16x16xf32>
    %17 = arith.mulf %16, %13 : vector<16x16xf32>
    %18 = arith.select %15, %13, %17 : vector<16x16xi1>, vector<16x16xf32>
    %cst_22 = arith.constant dense<0.000000e+00> : vector<16x16xf32>
    %19 = tpu.matmul %18, %4, %cst_22 {dimension_numbers = #tpu.dot_dimension_numbers<[1], [0], [0], [1], [0, 0, 1, 1], [], []>} : vector<16x16xf32>, vector<16x16xf32>, vector<16x16xf32> -> vector<16x16xf32>
    %cst_23 = arith.constant dense<0.000000e+00> : vector<16x4xf32>
    %20 = tpu.matmul %8, %5, %cst_23 {dimension_numbers = #tpu.dot_dimension_numbers<[1], [0], [0], [1], [0, 0, 1, 1], [], []>} : vector<16x16xf32>, vector<16x4xf32>, vector<16x4xf32> -> vector<16x4xf32>
    %c0_24 = arith.constant 0 : index
    %c0_25 = arith.constant 0 : index
    %21 = vector.load %arg9[%c0_24, %c0_25] : memref<1x4xf32, #tpu.memory_space<vmem>>, vector<1x4xf32>
    %22 = vector.broadcast %21 : vector<1x4xf32> to vector<16x4xf32>
    %23 = arith.addf %20, %22 : vector<16x4xf32>
    %cst_26 = arith.constant 0.000000e+00 : f32
    %24 = vector.broadcast %cst_26 : f32 to vector<16x4xf32>
    %25 = arith.cmpf ogt, %23, %24 : vector<16x4xf32>
    %cst_27 = arith.constant 0.00999999977 : f32
    %26 = vector.broadcast %cst_27 : f32 to vector<16x4xf32>
    %27 = arith.mulf %26, %23 : vector<16x4xf32>
    %28 = arith.select %25, %23, %27 : vector<16x4xi1>, vector<16x4xf32>
    %29 = vector.broadcast %6 : vector<1x4xf32> to vector<16x4xf32>
    %30 = arith.mulf %28, %29 : vector<16x4xf32>
    %cst_28 = arith.constant dense<0.000000e+00> : vector<16xf32>
    %31 = vector.multi_reduction <add>, %30, %cst_28 [1] : vector<16x4xf32> to vector<16xf32>
    %32 = vector.shape_cast %31 : vector<16xf32> to vector<16x1xf32>
    %c0_29 = arith.constant 0 : index
    %c0_30 = arith.constant 0 : index
    %33 = vector.load %arg11[%c0_29, %c0_30] : memref<1x1xf32, #tpu.memory_space<vmem>>, vector<1x1xf32>
    %34 = vector.broadcast %33 : vector<1x1xf32> to vector<16x1xf32>
    %35 = arith.addf %32, %34 : vector<16x1xf32>
    %cst_31 = arith.constant 0.000000e+00 : f32
    %36 = vector.broadcast %cst_31 : f32 to vector<16x1xf32>
    %37 = arith.cmpf ogt, %35, %36 : vector<16x1xf32>
    %cst_32 = arith.constant 0.00999999977 : f32
    %38 = vector.broadcast %cst_32 : f32 to vector<16x1xf32>
    %39 = arith.mulf %38, %35 : vector<16x1xf32>
    %40 = arith.select %37, %35, %39 : vector<16x1xi1>, vector<16x1xf32>
    %c0_33 = arith.constant 0 : index
    %c0_34 = arith.constant 0 : index
    %41 = vector.load %arg14[%c0_33, %c0_34] : memref<16x1xf32, #tpu.memory_space<vmem>>, vector<16x1xf32>
    %cst_35 = arith.constant 0.000000e+00 : f32
    %42 = vector.broadcast %cst_35 : f32 to vector<16x1xf32>
    %43 = arith.cmpf ogt, %40, %42 : vector<16x1xf32>
    %cst_36 = arith.constant 1.000000e+00 : f32
    %cst_37 = arith.constant 0.00999999977 : f32
    %44 = vector.broadcast %cst_36 : f32 to vector<16x1xf32>
    %45 = vector.broadcast %cst_37 : f32 to vector<16x1xf32>
    %46 = arith.select %43, %44, %45 : vector<16x1xi1>, vector<16x1xf32>
    %47 = arith.mulf %41, %46 : vector<16x1xf32>
    %48 = vector.broadcast %47 : vector<16x1xf32> to vector<16x4xf32>
    %49 = arith.mulf %28, %48 : vector<16x4xf32>
    %cst_38 = arith.constant dense<0.000000e+00> : vector<4xf32>
    %50 = vector.multi_reduction <add>, %49, %cst_38 [0] : vector<16x4xf32> to vector<4xf32>
    %51 = vector.shape_cast %50 : vector<4xf32> to vector<1x4xf32>
    %c0_39 = arith.constant 0 : index
    %c0_40 = arith.constant 0 : index
    %52 = vector.load %arg25[%c0_39, %c0_40] : memref<1x4xf32, #tpu.memory_space<vmem>>, vector<1x4xf32>
    tpu.vector_store %arg25[%c0_39, %c0_40], %51 {strides = array<i32>} : memref<1x4xf32, #tpu.memory_space<vmem>>, vector<1x4xf32>,
    %cst_41 = arith.constant dense<0.000000e+00> : vector<1xf32>
    %53 = vector.multi_reduction <add>, %47, %cst_41 [0] : vector<16x1xf32> to vector<1xf32>
    %54 = vector.shape_cast %53 : vector<1xf32> to vector<1x1xf32>
    %c0_42 = arith.constant 0 : index
    %c0_43 = arith.constant 0 : index
    %55 = vector.load %arg26[%c0_42, %c0_43] : memref<1x1xf32, #tpu.memory_space<vmem>>, vector<1x1xf32>
    tpu.vector_store %arg26[%c0_42, %c0_43], %54 {strides = array<i32>} : memref<1x1xf32, #tpu.memory_space<vmem>>, vector<1x1xf32>,
    %56 = vector.broadcast %47 : vector<16x1xf32> to vector<16x4xf32>
    %57 = vector.broadcast %6 : vector<1x4xf32> to vector<16x4xf32>
    %58 = arith.mulf %56, %57 : vector<16x4xf32>
    %cst_44 = arith.constant 0.000000e+00 : f32
    %59 = vector.broadcast %cst_44 : f32 to vector<16x4xf32>
    %60 = arith.cmpf ogt, %28, %59 : vector<16x4xf32>
    %cst_45 = arith.constant 1.000000e+00 : f32
    %cst_46 = arith.constant 0.00999999977 : f32
    %61 = vector.broadcast %cst_45 : f32 to vector<16x4xf32>
    %62 = vector.broadcast %cst_46 : f32 to vector<16x4xf32>
    %63 = arith.select %60, %61, %62 : vector<16x4xi1>, vector<16x4xf32>
    %64 = arith.mulf %58, %63 : vector<16x4xf32>
    %cst_47 = arith.constant dense<0.000000e+00> : vector<16x4xf32>
    %65 = tpu.matmul %8, %64, %cst_47 {dimension_numbers = #tpu.dot_dimension_numbers<[0], [0], [1], [1], [0, 1, 1, 1], [], []>} : vector<16x16xf32>, vector<16x4xf32>, vector<16x4xf32> -> vector<16x4xf32>
    %c0_48 = arith.constant 0 : index
    %c0_49 = arith.constant 0 : index
    %66 = vector.load %arg23[%c0_48, %c0_49] : memref<16x4xf32, #tpu.memory_space<vmem>>, vector<16x4xf32>
    tpu.vector_store %arg23[%c0_48, %c0_49], %65 {strides = array<i32>} : memref<16x4xf32, #tpu.memory_space<vmem>>, vector<16x4xf32>,
    %cst_50 = arith.constant dense<0.000000e+00> : vector<4xf32>
    %67 = vector.multi_reduction <add>, %64, %cst_50 [0] : vector<16x4xf32> to vector<4xf32>
    %68 = vector.shape_cast %67 : vector<4xf32> to vector<1x4xf32>
    %c0_51 = arith.constant 0 : index
    %c0_52 = arith.constant 0 : index
    %69 = vector.load %arg24[%c0_51, %c0_52] : memref<1x4xf32, #tpu.memory_space<vmem>>, vector<1x4xf32>
    tpu.vector_store %arg24[%c0_51, %c0_52], %68 {strides = array<i32>} : memref<1x4xf32, #tpu.memory_space<vmem>>, vector<1x4xf32>,
    %cst_53 = arith.constant dense<0.000000e+00> : vector<16x16xf32>
    %70 = tpu.matmul %64, %5, %cst_53 {dimension_numbers = #tpu.dot_dimension_numbers<[1], [1], [0], [0], [0, 0, 1, 0], [], []>} : vector<16x4xf32>, vector<16x4xf32>, vector<16x16xf32> -> vector<16x16xf32>
    %cst_54 = arith.constant 0.000000e+00 : f32
    %71 = vector.broadcast %cst_54 : f32 to vector<16x16xf32>
    %72 = arith.cmpf ogt, %8, %71 : vector<16x16xf32>
    %cst_55 = arith.constant 1.000000e+00 : f32
    %cst_56 = arith.constant 0.00999999977 : f32
    %73 = vector.broadcast %cst_55 : f32 to vector<16x16xf32>
    %74 = vector.broadcast %cst_56 : f32 to vector<16x16xf32>
    %75 = arith.select %72, %73, %74 : vector<16x16xi1>, vector<16x16xf32>
    %76 = arith.mulf %70, %75 : vector<16x16xf32>
    %cst_57 = arith.constant dense<0.000000e+00> : vector<16xf32>
    %77 = vector.multi_reduction <add>, %76, %cst_57 [0] : vector<16x16xf32> to vector<16xf32>
    %78 = vector.shape_cast %77 : vector<16xf32> to vector<1x16xf32>
    %c0_58 = arith.constant 0 : index
    %c0_59 = arith.constant 0 : index
    %79 = vector.load %arg22[%c0_58, %c0_59] : memref<1x16xf32, #tpu.memory_space<vmem>>, vector<1x16xf32>
    tpu.vector_store %arg22[%c0_58, %c0_59], %78 {strides = array<i32>} : memref<1x16xf32, #tpu.memory_space<vmem>>, vector<1x16xf32>,
    %80 = arith.truncf %76 : vector<16x16xf32> to vector<16x16xbf16>
    %cst_60 = arith.constant dense<0.000000e+00> : vector<16x16xf32>
    %81 = tpu.matmul %0, %80, %cst_60 {dimension_numbers = #tpu.dot_dimension_numbers<[1], [0], [0], [1], [0, 0, 1, 1], [], []>} : vector<16x16xbf16>, vector<16x16xbf16>, vector<16x16xf32> -> vector<16x16xf32>
    %cst_61 = arith.constant dense<0.000000e+00> : vector<16x16xf32>
    %82 = tpu.matmul %18, %81, %cst_61 {dimension_numbers = #tpu.dot_dimension_numbers<[0], [0], [1], [1], [0, 1, 1, 1], [], []>} : vector<16x16xf32>, vector<16x16xf32>, vector<16x16xf32> -> vector<16x16xf32>
    %c0_62 = arith.constant 0 : index
    %c0_63 = arith.constant 0 : index
    %83 = vector.load %arg21[%c0_62, %c0_63] : memref<16x16xf32, #tpu.memory_space<vmem>>, vector<16x16xf32>
    tpu.vector_store %arg21[%c0_62, %c0_63], %82 {strides = array<i32>} : memref<16x16xf32, #tpu.memory_space<vmem>>, vector<16x16xf32>,
    %cst_64 = arith.constant dense<0.000000e+00> : vector<16x16xf32>
    %84 = tpu.matmul %81, %4, %cst_64 {dimension_numbers = #tpu.dot_dimension_numbers<[1], [1], [0], [0], [0, 0, 1, 0], [], []>} : vector<16x16xf32>, vector<16x16xf32>, vector<16x16xf32> -> vector<16x16xf32>
    %cst_65 = arith.constant 0.000000e+00 : f32
    %85 = vector.broadcast %cst_65 : f32 to vector<16x16xf32>
    %86 = arith.cmpf ogt, %18, %85 : vector<16x16xf32>
    %cst_66 = arith.constant 1.000000e+00 : f32
    %cst_67 = arith.constant 0.00999999977 : f32
    %87 = vector.broadcast %cst_66 : f32 to vector<16x16xf32>
    %88 = vector.broadcast %cst_67 : f32 to vector<16x16xf32>
    %89 = arith.select %86, %87, %88 : vector<16x16xi1>, vector<16x16xf32>
    %90 = arith.mulf %84, %89 : vector<16x16xf32>
    %cst_68 = arith.constant dense<0.000000e+00> : vector<16x16xf32>
    %91 = tpu.matmul %7, %90, %cst_68 {dimension_numbers = #tpu.dot_dimension_numbers<[0], [0], [1], [1], [0, 1, 1, 1], [], []>} : vector<16x16xf32>, vector<16x16xf32>, vector<16x16xf32> -> vector<16x16xf32>
    %c0_69 = arith.constant 0 : index
    %c0_70 = arith.constant 0 : index
    %92 = vector.load %arg19[%c0_69, %c0_70] : memref<16x16xf32, #tpu.memory_space<vmem>>, vector<16x16xf32>
    tpu.vector_store %arg19[%c0_69, %c0_70], %91 {strides = array<i32>} : memref<16x16xf32, #tpu.memory_space<vmem>>, vector<16x16xf32>,
    %cst_71 = arith.constant dense<0.000000e+00> : vector<16xf32>
    %93 = vector.multi_reduction <add>, %90, %cst_71 [0] : vector<16x16xf32> to vector<16xf32>
    %94 = vector.shape_cast %93 : vector<16xf32> to vector<1x16xf32>
    %c0_72 = arith.constant 0 : index
    %c0_73 = arith.constant 0 : index
    %95 = vector.load %arg20[%c0_72, %c0_73] : memref<1x16xf32, #tpu.memory_space<vmem>>, vector<1x16xf32>
    tpu.vector_store %arg20[%c0_72, %c0_73], %94 {strides = array<i32>} : memref<1x16xf32, #tpu.memory_space<vmem>>, vector<1x16xf32>,
    %cst_74 = arith.constant dense<0.000000e+00> : vector<16x16xf32>
    %96 = tpu.matmul %90, %3, %cst_74 {dimension_numbers = #tpu.dot_dimension_numbers<[1], [1], [0], [0], [0, 0, 1, 0], [], []>} : vector<16x16xf32>, vector<16x16xf32>, vector<16x16xf32> -> vector<16x16xf32>
    %cst_75 = arith.constant 0.000000e+00 : f32
    %97 = vector.broadcast %cst_75 : f32 to vector<16x16xf32>
    %98 = arith.cmpf ogt, %7, %97 : vector<16x16xf32>
    %cst_76 = arith.constant 1.000000e+00 : f32
    %cst_77 = arith.constant 0.00999999977 : f32
    %99 = vector.broadcast %cst_76 : f32 to vector<16x16xf32>
    %100 = vector.broadcast %cst_77 : f32 to vector<16x16xf32>
    %101 = arith.select %98, %99, %100 : vector<16x16xi1>, vector<16x16xf32>
    %102 = arith.mulf %96, %101 : vector<16x16xf32>
    %cst_78 = arith.constant dense<0.000000e+00> : vector<16xf32>
    %103 = vector.multi_reduction <add>, %102, %cst_78 [0] : vector<16x16xf32> to vector<16xf32>
    %104 = vector.shape_cast %103 : vector<16xf32> to vector<1x16xf32>
    %c0_79 = arith.constant 0 : index
    %c0_80 = arith.constant 0 : index
    %105 = vector.load %arg18[%c0_79, %c0_80] : memref<1x16xf32, #tpu.memory_space<vmem>>, vector<1x16xf32>
    tpu.vector_store %arg18[%c0_79, %c0_80], %104 {strides = array<i32>} : memref<1x16xf32, #tpu.memory_space<vmem>>, vector<1x16xf32>,
    %106 = arith.truncf %102 : vector<16x16xf32> to vector<16x16xbf16>
    %cst_81 = arith.constant dense<0.000000e+00> : vector<16x16xf32>
    %107 = tpu.matmul %0, %106, %cst_81 {dimension_numbers = #tpu.dot_dimension_numbers<[1], [0], [0], [1], [0, 0, 1, 1], [], []>} : vector<16x16xbf16>, vector<16x16xbf16>, vector<16x16xf32> -> vector<16x16xf32>
    %cst_82 = arith.constant dense<0.000000e+00> : vector<16x16xf32>
    %108 = tpu.matmul %1, %107, %cst_82 {dimension_numbers = #tpu.dot_dimension_numbers<[0], [0], [1], [1], [0, 1, 1, 1], [], []>} : vector<16x16xf32>, vector<16x16xf32>, vector<16x16xf32> -> vector<16x16xf32>
    %c0_83 = arith.constant 0 : index
    %c0_84 = arith.constant 0 : index
    %109 = vector.load %arg17[%c0_83, %c0_84] : memref<16x16xf32, #tpu.memory_space<vmem>>, vector<16x16xf32>
    tpu.vector_store %arg17[%c0_83, %c0_84], %108 {strides = array<i32>} : memref<16x16xf32, #tpu.memory_space<vmem>>, vector<16x16xf32>,
    %cst_85 = arith.constant dense<0.000000e+00> : vector<16x16xf32>
    %110 = tpu.matmul %107, %2, %cst_85 {dimension_numbers = #tpu.dot_dimension_numbers<[1], [1], [0], [0], [0, 0, 1, 0], [], []>} : vector<16x16xf32>, vector<16x16xf32>, vector<16x16xf32> -> vector<16x16xf32>
    %c0_86 = arith.constant 0 : index
    %c0_87 = arith.constant 0 : index
    %111 = vector.load %arg16[%c0_86, %c0_87] : memref<16x16xf32, #tpu.memory_space<vmem>>, vector<16x16xf32>
    tpu.vector_store %arg16[%c0_86, %c0_87], %110 {strides = array<i32>} : memref<16x16xf32, #tpu.memory_space<vmem>>, vector<16x16xf32>,
    %112 = arith.truncf %102 : vector<16x16xf32> to vector<16x16xbf16>
    %113 = arith.truncf %9 : vector<16x16xf32> to vector<16x16xbf16>
    %cst_88 = arith.constant dense<0.000000e+00> : vector<16x16xf32>
    %114 = tpu.matmul %112, %113, %cst_88 {dimension_numbers = #tpu.dot_dimension_numbers<[1], [1], [0], [0], [0, 0, 1, 0], [], []>} : vector<16x16xbf16>, vector<16x16xbf16>, vector<16x16xf32> -> vector<16x16xf32>
    %c0_89 = arith.constant 0 : index
    %c0_90 = arith.constant 0 : index
    %115 = vector.load %arg15[%c0_89, %c0_90] : memref<16x16xf32, #tpu.memory_space<vmem>>, vector<16x16xf32>
    tpu.vector_store %arg15[%c0_89, %c0_90], %114 {strides = array<i32>} : memref<16x16xf32, #tpu.memory_space<vmem>>, vector<16x16xf32>,
    %c0_91 = arith.constant 0 : index
    %c0_92 = arith.constant 0 : index
    %116 = vector.load %arg15[%c0_91, %c0_92] : memref<16x16xf32, #tpu.memory_space<vmem>>, vector<16x16xf32>
    %117 = arith.truncf %76 : vector<16x16xf32> to vector<16x16xbf16>
    %118 = arith.truncf %19 : vector<16x16xf32> to vector<16x16xbf16>
    %cst_93 = arith.constant dense<0.000000e+00> : vector<16x16xf32>
    %119 = tpu.matmul %117, %118, %cst_93 {dimension_numbers = #tpu.dot_dimension_numbers<[1], [1], [0], [0], [0, 0, 1, 0], [], []>} : vector<16x16xbf16>, vector<16x16xbf16>, vector<16x16xf32> -> vector<16x16xf32>
    %120 = arith.addf %116, %119 : vector<16x16xf32>
    %c0_94 = arith.constant 0 : index
    %c0_95 = arith.constant 0 : index
    %121 = vector.load %arg15[%c0_94, %c0_95] : memref<16x16xf32, #tpu.memory_space<vmem>>, vector<16x16xf32>
    tpu.vector_store %arg15[%c0_94, %c0_95], %120 {strides = array<i32>} : memref<16x16xf32, #tpu.memory_space<vmem>>, vector<16x16xf32>,
    return
  }
}

</mosaic_0001>

<bundles_post_ra>
// kernel: jvp__.1
= control target key start
LH: loop header
LB: loop body
LE: loop exit
PB: predicated region body
PF: predicated region fallthrough
CT: control target
= control target key end

     0   :  { %vm53_vm0 = vcmask 130048   ;;  %v674_v5 = vmov 0.0   ;;  %vm675_vm1 = vmmov 0   ;;  %vm537_vm10 = vcmask 31744   ;;  %s834_s2 = inlined_call_operand.vmem [shape: f32[16,16], index: 2, kind: input, shape index: {}]   ;;  %s835_s1 = inlined_call_operand.vmem [shape: f32[16,16], index: 1, kind: input, shape index: {}]   ;;  %s836_s0 = inlined_call_operand.vmem [shape: bf16[16,16], index: 0, kind: input, shape index: {}]   ;;  %s837_s4 = inlined_call_operand.vmem [shape: f32[16,16], index: 4, kind: input, shape index: {}]   ;;  %s838_s3 = inlined_call_operand.vmem [shape: f32[1,16], index: 3, kind: input, shape index: {}]   ;;  %s839_s13 = inlined_call_operand.vmem [shape: f32[16,16], index: 13, kind: output, shape index: {1}]   ;;  %s840_s6 = inlined_call_operand.vmem [shape: f32[16,16], index: 6, kind: input, shape index: {}]   ;;  %s841_s5 = inlined_call_operand.vmem [shape: f32[1,16], index: 5, kind: input, shape index: {}]   ;;  %s842_s8 = inlined_call_operand.vmem [shape: f32[16,4], index: 8, kind: input, shape index: {}]   ;;  %s843_s7 = inlined_call_operand.vmem [shape: f32[1,16], index: 7, kind: input, shape index: {}]   ;;  %s844_s14 = inlined_call_operand.vmem [shape: f32[16,16], index: 14, kind: output, shape index: {2}]   ;;  %s845_s11 = inlined_call_operand.<no memory space> [shape: f32[1,1], index: 11, kind: input, shape index: {}]   ;;  %s846_s9 = inlined_call_operand.vmem [shape: f32[1,4], index: 9, kind: input, shape index: {}]   ;;  %s847_s10 = inlined_call_operand.vmem [shape: f32[1,4], index: 10, kind: input, shape index: {}]   ;;  %s848_s12 = inlined_call_operand.vmem [shape: f32[16,1], index: 12, kind: output, shape index: {0}]  }
   0x1   :  { %v51_v0 = vld [vmem:[%s834_s2] sm:$0xff]  ;;  %v52_v1 = vld [vmem:[%s834_s2 + $0x8] sm:$0xff]  ;;  %622 = vmatprep.subr.bf16.mxu1 %v674_v5  ;;  %624 = vmatprep.mubr.msk.bf16.mxu1 %vm675_vm1, %v674_v5  ;;  %v20_v53 = vstv %s845_s11  ;;  %vm559_vm11 = vcmask 7168  }
   0x2   :  { %v49_v2 = vld [vmem:[%s835_s1] sm:$0xff]  ;;  %v655_v3 = vpack.c.bf16 %v52_v1, %v51_v0  ;;  %v50_v4 = vld [vmem:[%s835_s1 + $0x8] sm:$0xff]  ;;  %21 = vst [vmem:[#allocation2] sm:$0x1] %v20_v53 }
   0x3   :  { %619 = vmatprep.mubr.msk.f32.mxu0 %vm53_vm0, %v49_v2  ;;  %v673_v9 = vld [vmem:[%s836_s0] sm:$0xff]   ;;  %v199_v11 = vld [vmem:[%s837_s4 + $0x8] sm:$0xff] }
   0x4   :  { %656 = vmatprep.subr.bf16.mxu0 %v655_v3  ;;  %v198_v10 = vld [vmem:[%s837_s4] sm:$0xff]  ;;  %v295_v25 = vld [vmem:[%s840_s6 + $0x8] sm:$0xff] }
   0x5   :  { %658 = vmatpush3.bf16.msra.mxu0 %v655_v3  ;;  %v659_v12 = vpack.c.bf16 %v199_v11, %v198_v10  ;;  %v580_v13 = vld [vmem:[%s838_s3] ss:$0 sm:$0xff]  ;;  %v433_v40 = vld [vmem:[%s842_s8 + $0x8] sm:$0xff] }
   0x6   :  { %v294_v24 = vld [vmem:[%s840_s6] sm:$0xff] }
   0x7   :  { %660 = vmatprep.subr.bf16.mxu0 %v659_v12  ;;  %v663_v26 = vpack.c.bf16 %v295_v25, %v294_v24  ;;  %v583_v27 = vld [vmem:[%s841_s5] ss:$0 sm:$0xff] }
   0x8   :  { %620 = vmatmul.mubr.msk.f32.vlgmr.msra.gmra.mrb[0].mxu0 %vm53_vm0, %v50_v4  ;;  %v432_v39 = vld [vmem:[%s842_s8] sm:$0xff] }
   0x9   :  { %662 = vmatpush3.bf16.msra.mxu0 %v659_v12  ;;  %v667_v41 = vpack.c.bf16 %v433_v40, %v432_v39  ;;  %v588_v42 = vld [vmem:[%s843_s7] ss:$0 sm:$0xff] }
   0xa   :  { %664 = vmatprep.subr.bf16.mxu0 %v663_v26  ;;  %v590_v54 = vld [vmem:[%s846_s9] ss:$0 sm:$0xff] }
   0xb   :  { %v593_v61 = vld [vmem:[%s847_s10] ss:$0 sm:$0xff] }
   0xc   :  { %v594_v4 = vld [vmem:[#allocation2] ss:$0 sm:$0xff] }
  0xdb   :  { %v621_v6 = vpop.f32.mrb[0].mxu0 }
  0xdc   :  { %v126_v7 = vpop.f32.mrb[1].mxu0 }
  0xdd   :  { %v135_v8 = vpack.c.bf16 %v621_v6, %v126_v7 }
  0xdf   :  { %623 = vmatpush3.bf16.msra.mxu1 %v135_v8 }
  0xe0   :  { %642 = vmatprep.subr.bf16.mxu1 %v674_v5 }
  0xe2   :  { %625 = vmatmul.mubr.msk.bf16.vlgmr.msra.gmra.mrb[0].mxu1 %vm53_vm0, %v673_v9 }
  0xe3   :  { %644 = vmatprep.mubr.msk.bf16.mxu1 %vm675_vm1, %v674_v5 }
 0x1b5   :  { %v185_v14 = vpop.f32.mrb[0].mxu1 }
 0x1b6   :  { %v186_v15 = vadd.f32 %v580_v13, %v185_v14  ;;  %v626_v16 = vpop.f32.mrb[1].mxu1 }
 0x1b7   :  { %v188_v17 = vpop.f32.mrb[2].mxu1 }
 0x1b8   :  { %vm192_vm2 = vcmp.gt.f32.partialorder %v186_v15, 0.0  ;;  %v194_v18 = vmul.f32 0.01, %v186_v15  ;;  %v189_v19 = vadd.f32 %v580_v13, %v188_v17  ;;  %v627_v20 = vpop.f32.mrb[3].mxu1 }
 0x1ba   :  { %vm193_vm3 = vcmp.gt.f32.partialorder %v189_v19, 0.0  ;;  %v195_v21 = vmul.f32 0.01, %v189_v19  ;;  %v196_v22 = vsel %vm192_vm2, %v186_v15, %v194_v18 }
 0x1bb   :  { %632 = vmatprep.mubr.msk.f32.mxu0 %vm53_vm0, %v196_v22  ;;  %562 = vst.msk [vmem:[%s839_s13] sm:$0xff] %vm53_vm0, %v196_v22 }
 0x1bc   :  { %v197_v23 = vsel %vm193_vm3, %v189_v19, %v195_v21 }
 0x1bd   :  { %563 = vst.msk [vmem:[%s839_s13 + $0x8] sm:$0xff] %vm53_vm0, %v197_v23  ;;  %633 = vmatmul.mubr.msk.f32.vlgmr.msra.gmra.mrb[2].mxu0 %vm53_vm0, %v197_v23 }
 0x1be   :  { %666 = vmatpush3.bf16.msra.mxu0 %v663_v26 }
 0x1bf   :  { %668 = vmatprep.subr.bf16.mxu0 %v667_v41 }
 0x290   :  { %v634_v28 = vpop.f32.mrb[2].mxu0 }
 0x291   :  { %v285_v29 = vadd.f32 %v634_v28, %v583_v27  ;;  %v279_v30 = vpop.f32.mrb[3].mxu0 }
 0x292   :  { %v280_v31 = vadd.f32 %v583_v27, %v279_v30 }
 0x293   :  { %v291_v32 = vmul.f32 0.01, %v285_v29  ;;  %vm289_vm4 = vcmp.gt.f32.partialorder %v285_v29, 0.0 }
 0x294   :  { %vm288_vm5 = vcmp.gt.f32.partialorder %v280_v31, 0.0  ;;  %v290_v33 = vmul.f32 0.01, %v280_v31 }
 0x295   :  { %v293_v35 = vsel %vm289_vm4, %v285_v29, %v291_v32 }
 0x296   :  { %v292_v34 = vsel %vm288_vm5, %v280_v31, %v290_v33 }
 0x297   :  { %639 = vmatprep.mubr.msk.f32.mxu0 %vm53_vm0, %v292_v34 }
 0x298   :  { %640 = vmatmul.mubr.msk.f32.vlgmr.msra.gmra.mrb[4].mxu0 %vm53_vm0, %v293_v35 }
 0x299   :  { %670 = vmatpush3.bf16.msra.mxu0 %v667_v41 }
 0x36b   :  { %v641_v36 = vpop.f32.mrb[4].mxu0 }
 0x36c   :  { %v368_v37 = vpop.f32.mrb[5].mxu0 }
 0x36d   :  { %v377_v38 = vpack.c.bf16 %v641_v36, %v368_v37 }
 0x36f   :  { %643 = vmatpush3.bf16.msra.mxu1 %v377_v38 }
 0x372   :  { %645 = vmatmul.mubr.msk.bf16.vlgmr.msra.gmra.mrb[4].mxu1 %vm53_vm0, %v673_v9 }
 0x445   :  { %v419_v43 = vpop.f32.mrb[4].mxu1 }
 0x446   :  { %v420_v44 = vadd.f32 %v588_v42, %v419_v43  ;;  %v646_v45 = vpop.f32.mrb[5].mxu1 }
 0x447   :  { %v422_v46 = vpop.f32.mrb[6].mxu1 }
 0x448   :  { %vm426_vm6 = vcmp.gt.f32.partialorder %v420_v44, 0.0  ;;  %v428_v47 = vmul.f32 0.01, %v420_v44  ;;  %v423_v48 = vadd.f32 %v588_v42, %v422_v46  ;;  %v647_v49 = vpop.f32.mrb[7].mxu1 }
 0x44a   :  { %vm427_vm7 = vcmp.gt.f32.partialorder %v423_v48, 0.0  ;;  %v429_v50 = vmul.f32 0.01, %v423_v48  ;;  %v430_v51 = vsel %vm426_vm6, %v420_v44, %v428_v47 }
 0x44b   :  { %652 = vmatprep.mubr.msk.f32.mxu0 %vm53_vm0, %v430_v51  ;;  %564 = vst.msk [vmem:[%s844_s14] sm:$0xff] %vm53_vm0, %v430_v51 }
 0x44c   :  { %v431_v52 = vsel %vm427_vm7, %v423_v48, %v429_v50 }
 0x44d   :  { %565 = vst.msk [vmem:[%s844_s14 + $0x8] sm:$0xff] %vm53_vm0, %v431_v52  ;;  %653 = vmatmul.mubr.msk.f32.vlgmr.msra.gmra.mrb[6].mxu0 %vm53_vm0, %v431_v52 }
 0x520   :  { %v654_v55 = vpop.f32.mrb[6].mxu0 }
 0x521   :  { %v519_v56 = vadd.f32 %v654_v55, %v590_v54  ;;  %v513_v57 = vpop.f32.mrb[7].mxu0 }
 0x522   :  { %v514_v58 = vadd.f32 %v590_v54, %v513_v57 }
 0x523   :  { %vm523_vm8 = vcmp.gt.f32.partialorder %v519_v56, 0.0  ;;  %v525_v59 = vmul.f32 0.01, %v519_v56 }
 0x524   :  { %v524_v60 = vmul.f32 0.01, %v514_v58  ;;  %vm522_vm9 = vcmp.gt.f32.partialorder %v514_v58, 0.0 }
 0x525   :  { %v527_v63 = vsel %vm523_vm8, %v519_v56, %v525_v59 }
 0x526   :  { %v526_v62 = vsel %vm522_vm9, %v514_v58, %v524_v60  ;;  %v536_v2 = vmul.f32 %v593_v61, %v527_v63 }
 0x527   :  { %v535_v0 = vmul.f32 %v593_v61, %v526_v62 }
 0x528   :  { %v541_v3 = vsel %vm537_vm10, %v536_v2, 0.0 }
 0x529   :  { %v538_v1 = vsel %vm537_vm10, %v535_v0, 0.0 }
 0x52a   :  { %539 = vadd.xlane.f32.xlu0 %v538_v1 }
 0x52e   :  { %542 = vadd.xlane.f32.xlu0 %v541_v3 }
 0x5b7   :  { %v540_v5 = vpop.xlane.xlu0 %539 }
 0x5b8   :  { %v551_v6 = vadd.f32 %v594_v4, %v540_v5 }
 0x5ba   :  { %vm553_vm12 = vcmp.gt.f32.partialorder %v551_v6, 0.0  ;;  %v555_v7 = vmul.f32 0.01, %v551_v6 }
 0x5bb   :  { %v543_v8 = vpop.xlane.xlu0 %542 }
 0x5bc   :  { %v557_v9 = vsel %vm553_vm12, %v551_v6, %v555_v7  ;;  %v552_v10 = vadd.f32 %v594_v4, %v543_v8 }
 0x5bd   :  { %560 = vst.msk [vmem:[%s848_s12] sm:$0xff] %vm559_vm11, %v557_v9 }
 0x5be   :  { %vm554_vm13 = vcmp.gt.f32.partialorder %v552_v10, 0.0  ;;  %v556_v11 = vmul.f32 0.01, %v552_v10 }
 0x5c0   :  { %v558_v12 = vsel %vm554_vm13, %v552_v10, %v556_v11 }
 0x5c1   :  { %561 = vst.msk [vmem:[%s848_s12 + $0x8] sm:$0xff] %vm559_vm11, %v558_v12 }

</bundles_post_ra>
